<compile_context>
chip_gen: v6e
topology: v6e:2x2x1
jax: 0.10.0
libtpu: 0.0.40
codegen_flags: <defaults>
</compile_context>

<pallas_src>
import functools
import math

import jax
import jax.numpy as jnp
from jax.experimental import pallas as pl
from jax.experimental.pallas import tpu as pltpu


def mhsa_kernel(x_ref, w_qkv_ref, b_qkv_ref, w_out_ref, b_out_ref, o_ref,
                *, num_heads, eps):
    H = num_heads
    S, E = x_ref.shape                        # batch dim squeezed by BlockSpec

    x = x_ref[...].astype(jnp.float32)        # (S, E)

    # ---- LayerNorm (standardization only; affine folded into QKV weights) ----
    mean = jnp.mean(x, axis=-1, keepdims=True)
    var = jnp.mean(jnp.square(x - mean), axis=-1, keepdims=True)
    xn = (x - mean) * jax.lax.rsqrt(var + eps)                   # (S, E) f32

    # ---- per-head QKV projection as ONE batched matmul ----
    # (3H, S, E) @ (3H, E, D) -> (3H, S, D); bf16 operands, f32 accumulation.
    xn_b = jnp.broadcast_to(xn.astype(jnp.bfloat16)[None], (3 * H, S, E))
    qkv = jnp.einsum("gse,ged->gsd", xn_b, w_qkv_ref[...],
                     preferred_element_type=jnp.float32)
    qkv = qkv + b_qkv_ref[...]                # (3H, S, D); LN affine + scale folded

    # Leading-dim slices: no lane/sublane relayout.
    q = qkv[:H].astype(jnp.bfloat16)          # (H, S, D)
    k = qkv[H:2 * H].astype(jnp.bfloat16)     # (H, S, D)
    v = qkv[2 * H:].astype(jnp.bfloat16)      # (H, S, D)

    # ---- attention scores + softmax, all heads batched ----
    s = jnp.einsum("hqd,hkd->hqk", q, k,
                   preferred_element_type=jnp.float32)           # (H, S, S) f32
    s_max = jnp.max(s, axis=-1, keepdims=True)
    p = jnp.exp(s - s_max)
    denom = jnp.sum(p, axis=-1, keepdims=True)
    p = p * pl.reciprocal(denom, approx=True)                    # EUP slot

    o = jnp.einsum("hqk,hkd->hqd", p.astype(jnp.bfloat16), v,
                   preferred_element_type=jnp.float32)           # (H, S, D)

    # ---- output projection, concat folded away ----
    # (H, S, D) @ (H, D, E) -> (H, S, E), then sum over heads (major-dim add).
    out_h = jnp.einsum("hsd,hde->hse", o.astype(jnp.bfloat16), w_out_ref[...],
                       preferred_element_type=jnp.float32)
    out = jnp.sum(out_h, axis=0) + b_out_ref[...]                # (S, E)

    o_ref[...] = out.astype(o_ref.dtype)


def mhsa_block(x, params, *, num_heads, eps=1e-5):
    """x: (B, S, E) float32. params: PyTorch-shaped module parameters."""
    B, S, E = x.shape
    H = num_heads
    assert E % H == 0
    D = E // H
    scale = 1.0 / math.sqrt(D)

    # ---- wrapper-side weight preparation (one-time, outside the kernel) ----
    ln_w = params["ln_w"].astype(jnp.float32)                    # (E,)
    ln_b = params["ln_b"].astype(jnp.float32)                    # (E,)

    # in_proj_weight: (3E, E), rows [Q; K; V], head-major within each block.
    # Reorder to (3H, E, D) so q/k/v for head h come out already head-batched.
    w3 = params["in_proj_weight"].astype(jnp.float32)
    w3 = w3.reshape(3, H, D, E).transpose(0, 1, 3, 2)            # (3, H, E, D)

    # Fold 1/sqrt(D) into the Q weights/bias (free, wrapper-side).
    qkv_scale = jnp.array([scale, 1.0, 1.0], dtype=jnp.float32).reshape(3, 1, 1, 1)
    w3_scaled = w3 * qkv_scale                                   # (3, H, E, D)

    # Fold the LayerNorm affine into the QKV projection:
    #   (xn*ln_w + ln_b) @ W + b  ==  xn @ (diag(ln_w) @ W) + (ln_b @ W + b)
    w_qkv = (w3_scaled * ln_w[None, None, :, None]).reshape(3 * H, E, D)
    w_qkv = w_qkv.astype(jnp.bfloat16)

    b3 = params["in_proj_bias"].astype(jnp.float32).reshape(3, H, D)
    b3 = b3 * qkv_scale.reshape(3, 1, 1)
    b_fold = jnp.einsum("e,ghed->ghd", ln_b, w3_scaled)          # (3, H, D)
    b_qkv = (b3 + b_fold).reshape(3 * H, 1, D).astype(jnp.float32)

    # out_proj.weight: (E, E); out = concat_h(o_h) @ W^T + b
    #   => out = sum_h o_h @ (W^T)[h*D:(h+1)*D, :]
    w_out = params["out_proj_weight"].astype(jnp.float32).T.reshape(H, D, E)
    w_out = w_out.astype(jnp.bfloat16)
    b_out = params["out_proj_bias"].astype(jnp.float32).reshape(1, E)

    kernel = functools.partial(mhsa_kernel, num_heads=H, eps=eps)

    return pl.pallas_call(
        kernel,
        out_shape=jax.ShapeDtypeStruct((B, S, E), x.dtype),
        grid_spec=pltpu.PrefetchScalarGridSpec(
            num_scalar_prefetch=0,
            grid=(B,),
            in_specs=[
                pl.BlockSpec((None, S, E), lambda b: (b, 0, 0)),    # x (batch squeezed)
                pl.BlockSpec((3 * H, E, D), lambda b: (0, 0, 0)),   # per-head QKV W (LN+scale folded)
                pl.BlockSpec((3 * H, 1, D), lambda b: (0, 0, 0)),   # per-head QKV b (LN folded)
                pl.BlockSpec((H, D, E), lambda b: (0, 0, 0)),       # per-head out-proj W
                pl.BlockSpec((1, E), lambda b: (0, 0)),             # out-proj b
            ],
            out_specs=pl.BlockSpec((None, S, E), lambda b: (b, 0, 0)),
        ),
        compiler_params=pltpu.CompilerParams(
            dimension_semantics=("parallel",),          # feeds both v7x TCs at B>=2
            vmem_limit_bytes=32 * 1024 * 1024,
        ),
    )(x, w_qkv, b_qkv, w_out, b_out)


def mhsa_reference(x, params, *, num_heads):
    """Pure-JAX f32 reference matching PyTorch semantics (dropout=0, eval)."""
    B, S, E = x.shape
    D = E // num_heads
    mean = jnp.mean(x, -1, keepdims=True)
    var = jnp.mean((x - mean) ** 2, -1, keepdims=True)
    xn = (x - mean) / jnp.sqrt(var + 1e-5)
    xn = xn * params["ln_w"] + params["ln_b"]
    qkv = xn @ params["in_proj_weight"].T + params["in_proj_bias"]
    q, k, v = jnp.split(qkv, 3, axis=-1)

    def split_heads(t):
        return t.reshape(B, S, num_heads, D).transpose(0, 2, 1, 3)

    q, k, v = split_heads(q), split_heads(k), split_heads(v)
    s = jnp.einsum("bhsd,bhtd->bhst", q, k) / math.sqrt(D)
    p = jax.nn.softmax(s, axis=-1)
    o = jnp.einsum("bhst,bhtd->bhsd", p, v)
    o = o.transpose(0, 2, 1, 3).reshape(B, S, E)
    return o @ params["out_proj_weight"].T + params["out_proj_bias"]


if __name__ == "__main__":
    # Small shapes consistent with the module: batch=2, seq=8, embedding=32, 4 heads.
    B, S, E, H = 2, 8, 32, 4
    key = jax.random.PRNGKey(0)
    kx, k1, k2, k3, k4, k5, k6 = jax.random.split(key, 7)

    x = jax.random.normal(kx, (B, S, E), dtype=jnp.float32)

    params = {
        "ln_w": 1.0 + 0.1 * jax.random.normal(k1, (E,), dtype=jnp.float32),
        "ln_b": 0.1 * jax.random.normal(k2, (E,), dtype=jnp.float32),
        "in_proj_weight": jax.random.normal(k3, (3 * E, E), dtype=jnp.float32)
                          / math.sqrt(E),
        "in_proj_bias": 0.05 * jax.random.normal(k4, (3 * E,), dtype=jnp.float32),
        "out_proj_weight": jax.random.normal(k5, (E, E), dtype=jnp.float32)
                           / math.sqrt(E),
        "out_proj_bias": 0.05 * jax.random.normal(k6, (E,), dtype=jnp.float32),
    }

    out = mhsa_block(x, params, num_heads=H)
    out = jax.block_until_ready(out)

    ref = mhsa_reference(x, params, num_heads=H)
    assert out.shape == (B, S, E)
    # bf16 MXU operands (+ approx reciprocal) vs. f32 reference => ~1% deviation.
    assert jnp.allclose(out, ref, atol=5e-2, rtol=5e-2), "mismatch vs reference"

    print("KERNEL_OK")
</pallas_src>

<mosaic_0001>
module attributes {stable_mosaic.version = 11 : i64} {
  func.func @mhsa_kernel(%arg0: i32, %arg1: memref<1x8x32xf32, #tpu.memory_space<vmem>>, %arg2: memref<12x32x8xbf16, #tpu.memory_space<vmem>>, %arg3: memref<12x1x8xf32, #tpu.memory_space<vmem>>, %arg4: memref<4x8x32xbf16, #tpu.memory_space<vmem>>, %arg5: memref<1x32xf32, #tpu.memory_space<vmem>>, %arg6: memref<1x8x32xf32, #tpu.memory_space<vmem>>) attributes {dimension_semantics = [#tpu.dimension_semantics<parallel>], iteration_bounds = array<i64: 2>, scalar_prefetch = 0 : i64, scratch_operands = 0 : i64, tpu.core_type = #tpu.core_type<tc>, window_params = [{transform_indices = @transform_0, window_bounds = array<i64: 1, 8, 32>}, {pipeline_mode = #tpu.pipeline_mode<synchronous>, transform_indices = @transform_1, window_bounds = array<i64: 12, 32, 8>}, {pipeline_mode = #tpu.pipeline_mode<synchronous>, transform_indices = @transform_2, window_bounds = array<i64: 12, 1, 8>}, {pipeline_mode = #tpu.pipeline_mode<synchronous>, transform_indices = @transform_3, window_bounds = array<i64: 4, 8, 32>}, {pipeline_mode = #tpu.pipeline_mode<synchronous>, transform_indices = @transform_4, window_bounds = array<i64: 1, 32>}, {transform_indices = @transform_5, window_bounds = array<i64: 1, 8, 32>}]} {
    %c0 = arith.constant 0 : index
    %c0_0 = arith.constant 0 : index
    %c0_1 = arith.constant 0 : index
    %0 = vector.load %arg1[%c0, %c0_0, %c0_1] : memref<1x8x32xf32, #tpu.memory_space<vmem>>, vector<1x8x32xf32>
    %1 = vector.shape_cast %0 : vector<1x8x32xf32> to vector<8x32xf32>
    %cst = arith.constant dense<0.000000e+00> : vector<8xf32>
    %2 = vector.multi_reduction <add>, %1, %cst [1] : vector<8x32xf32> to vector<8xf32>
    %3 = vector.shape_cast %2 : vector<8xf32> to vector<8x1xf32>
    %cst_2 = arith.constant 3.200000e+01 : f32
    %4 = vector.broadcast %cst_2 : f32 to vector<8x1xf32>
    %5 = arith.divf %3, %4 : vector<8x1xf32>
    %6 = vector.broadcast %5 : vector<8x1xf32> to vector<8x32xf32>
    %7 = arith.subf %1, %6 : vector<8x32xf32>
    %8 = arith.mulf %7, %7 : vector<8x32xf32>
    %cst_3 = arith.constant dense<0.000000e+00> : vector<8xf32>
    %9 = vector.multi_reduction <add>, %8, %cst_3 [1] : vector<8x32xf32> to vector<8xf32>
    %10 = vector.shape_cast %9 : vector<8xf32> to vector<8x1xf32>
    %cst_4 = arith.constant 3.200000e+01 : f32
    %11 = vector.broadcast %cst_4 : f32 to vector<8x1xf32>
    %12 = arith.divf %10, %11 : vector<8x1xf32>
    %13 = vector.broadcast %5 : vector<8x1xf32> to vector<8x32xf32>
    %14 = arith.subf %1, %13 : vector<8x32xf32>
    %cst_5 = arith.constant 9.99999974E-6 : f32
    %15 = vector.broadcast %cst_5 : f32 to vector<8x1xf32>
    %16 = arith.addf %12, %15 : vector<8x1xf32>
    %17 = math.rsqrt %16 : vector<8x1xf32>
    %18 = vector.broadcast %17 : vector<8x1xf32> to vector<8x32xf32>
    %19 = arith.mulf %14, %18 : vector<8x32xf32>
    %20 = arith.truncf %19 : vector<8x32xf32> to vector<8x32xbf16>
    %21 = vector.shape_cast %20 : vector<8x32xbf16> to vector<1x8x32xbf16>
    %22 = vector.shape_cast %21 : vector<1x8x32xbf16> to vector<1x8x32xbf16>
    %23 = vector.broadcast %22 : vector<1x8x32xbf16> to vector<12x8x32xbf16>
    %c0_6 = arith.constant 0 : index
    %c0_7 = arith.constant 0 : index
    %c0_8 = arith.constant 0 : index
    %24 = vector.load %arg2[%c0_6, %c0_7, %c0_8] : memref<12x32x8xbf16, #tpu.memory_space<vmem>>, vector<12x32x8xbf16>
    "tpu.trace_start"() <{level = 10 : i32, message = "gse,ged->gsd"}> : () -> ()
    %cst_9 = arith.constant dense<0.000000e+00> : vector<12x8x8xf32>
    %25 = tpu.matmul %23, %24, %cst_9 {dimension_numbers = #tpu.dot_dimension_numbers<[2], [1], [1], [2], [0, 0, 0, 1, 1, 2], [0], [0]>} : vector<12x8x32xbf16>, vector<12x32x8xbf16>, vector<12x8x8xf32> -> vector<12x8x8xf32>
    "tpu.trace_stop"() : () -> ()
    %c0_10 = arith.constant 0 : index
    %c0_11 = arith.constant 0 : index
    %c0_12 = arith.constant 0 : index
    %26 = vector.load %arg3[%c0_10, %c0_11, %c0_12] : memref<12x1x8xf32, #tpu.memory_space<vmem>>, vector<12x1x8xf32>
    %27 = vector.broadcast %26 : vector<12x1x8xf32> to vector<12x8x8xf32>
    %28 = arith.addf %25, %27 : vector<12x8x8xf32>
    %29 = vector.extract_strided_slice %28 {offsets = [0, 0, 0], sizes = [4, 8, 8], strides = [1, 1, 1]} : vector<12x8x8xf32> to vector<4x8x8xf32>
    %30 = arith.truncf %29 : vector<4x8x8xf32> to vector<4x8x8xbf16>
    %31 = vector.extract_strided_slice %28 {offsets = [4, 0, 0], sizes = [4, 8, 8], strides = [1, 1, 1]} : vector<12x8x8xf32> to vector<4x8x8xf32>
    %32 = arith.truncf %31 : vector<4x8x8xf32> to vector<4x8x8xbf16>
    %33 = vector.extract_strided_slice %28 {offsets = [8, 0, 0], sizes = [4, 8, 8], strides = [1, 1, 1]} : vector<12x8x8xf32> to vector<4x8x8xf32>
    %34 = arith.truncf %33 : vector<4x8x8xf32> to vector<4x8x8xbf16>
    "tpu.trace_start"() <{level = 10 : i32, message = "hqd,hkd->hqk"}> : () -> ()
    %cst_13 = arith.constant dense<0.000000e+00> : vector<4x8x8xf32>
    %35 = tpu.matmul %30, %32, %cst_13 {dimension_numbers = #tpu.dot_dimension_numbers<[2], [2], [1], [1], [0, 0, 0, 1, 1, 1], [0], [0]>} : vector<4x8x8xbf16>, vector<4x8x8xbf16>, vector<4x8x8xf32> -> vector<4x8x8xf32>
    "tpu.trace_stop"() : () -> ()
    %cst_14 = arith.constant dense<0xFF800000> : vector<4x8xf32>
    %36 = vector.multi_reduction <maximumf>, %35, %cst_14 [2] : vector<4x8x8xf32> to vector<4x8xf32>
    %37 = vector.shape_cast %36 : vector<4x8xf32> to vector<4x8x1xf32>
    %38 = vector.broadcast %37 : vector<4x8x1xf32> to vector<4x8x8xf32>
    %39 = arith.subf %35, %38 : vector<4x8x8xf32>
    %40 = math.exp %39 : vector<4x8x8xf32>
    %cst_15 = arith.constant dense<0.000000e+00> : vector<4x8xf32>
    %41 = vector.multi_reduction <add>, %40, %cst_15 [2] : vector<4x8x8xf32> to vector<4x8xf32>
    %42 = vector.shape_cast %41 : vector<4x8xf32> to vector<4x8x1xf32>
    %43 = tpu.reciprocal %42 {approx = true} : vector<4x8x1xf32> -> vector<4x8x1xf32>
    %44 = vector.broadcast %43 : vector<4x8x1xf32> to vector<4x8x8xf32>
    %45 = arith.mulf %40, %44 : vector<4x8x8xf32>
    %46 = arith.truncf %45 : vector<4x8x8xf32> to vector<4x8x8xbf16>
    "tpu.trace_start"() <{level = 10 : i32, message = "hqk,hkd->hqd"}> : () -> ()
    %cst_16 = arith.constant dense<0.000000e+00> : vector<4x8x8xf32>
    %47 = tpu.matmul %46, %34, %cst_16 {dimension_numbers = #tpu.dot_dimension_numbers<[2], [1], [1], [2], [0, 0, 0, 1, 1, 2], [0], [0]>} : vector<4x8x8xbf16>, vector<4x8x8xbf16>, vector<4x8x8xf32> -> vector<4x8x8xf32>
    "tpu.trace_stop"() : () -> ()
    %48 = arith.truncf %47 : vector<4x8x8xf32> to vector<4x8x8xbf16>
    %c0_17 = arith.constant 0 : index
    %c0_18 = arith.constant 0 : index
    %c0_19 = arith.constant 0 : index
    %49 = vector.load %arg4[%c0_17, %c0_18, %c0_19] : memref<4x8x32xbf16, #tpu.memory_space<vmem>>, vector<4x8x32xbf16>
    "tpu.trace_start"() <{level = 10 : i32, message = "hsd,hde->hse"}> : () -> ()
    %cst_20 = arith.constant dense<0.000000e+00> : vector<4x8x32xf32>
    %50 = tpu.matmul %48, %49, %cst_20 {dimension_numbers = #tpu.dot_dimension_numbers<[2], [1], [1], [2], [0, 0, 0, 1, 1, 2], [0], [0]>} : vector<4x8x8xbf16>, vector<4x8x32xbf16>, vector<4x8x32xf32> -> vector<4x8x32xf32>
    "tpu.trace_stop"() : () -> ()
    %cst_21 = arith.constant dense<0.000000e+00> : vector<8x32xf32>
    %51 = vector.multi_reduction <add>, %50, %cst_21 [0] : vector<4x8x32xf32> to vector<8x32xf32>
    %c0_22 = arith.constant 0 : index
    %c0_23 = arith.constant 0 : index
    %52 = vector.load %arg5[%c0_22, %c0_23] : memref<1x32xf32, #tpu.memory_space<vmem>>, vector<1x32xf32>
    %53 = vector.broadcast %52 : vector<1x32xf32> to vector<8x32xf32>
    %54 = arith.addf %51, %53 : vector<8x32xf32>
    %c0_24 = arith.constant 0 : index
    %c0_25 = arith.constant 0 : index
    %c0_26 = arith.constant 0 : index
    %55 = vector.load %arg6[%c0_24, %c0_25, %c0_26] : memref<1x8x32xf32, #tpu.memory_space<vmem>>, vector<1x8x32xf32>
    %56 = vector.shape_cast %55 : vector<1x8x32xf32> to vector<8x32xf32>
    %57 = vector.shape_cast %54 : vector<8x32xf32> to vector<1x8x32xf32>
    tpu.vector_store %arg6[%c0_24, %c0_25, %c0_26], %57 {strides = array<i32>} : memref<1x8x32xf32, #tpu.memory_space<vmem>>, vector<1x8x32xf32>,
    return
  }
  func.func @transform_0(%arg0: i32) -> (i32, i32, i32) {
    %c0_i32 = arith.constant 0 : i32
    %c0_i32_0 = arith.constant 0 : i32
    %c0_i32_1 = arith.constant 0 : i32
    return %arg0, %c0_i32, %c0_i32_0 : i32, i32, i32
  }
  func.func @transform_1(%arg0: i32) -> (i32, i32, i32) {
    %c0_i32 = arith.constant 0 : i32
    %c0_i32_0 = arith.constant 0 : i32
    %c0_i32_1 = arith.constant 0 : i32
    %c0_i32_2 = arith.constant 0 : i32
    return %c0_i32, %c0_i32_0, %c0_i32_1 : i32, i32, i32
  }
  func.func @transform_2(%arg0: i32) -> (i32, i32, i32) {
    %c0_i32 = arith.constant 0 : i32
    %c0_i32_0 = arith.constant 0 : i32
    %c0_i32_1 = arith.constant 0 : i32
    %c0_i32_2 = arith.constant 0 : i32
    return %c0_i32, %c0_i32_0, %c0_i32_1 : i32, i32, i32
  }
  func.func @transform_3(%arg0: i32) -> (i32, i32, i32) {
    %c0_i32 = arith.constant 0 : i32
    %c0_i32_0 = arith.constant 0 : i32
    %c0_i32_1 = arith.constant 0 : i32
    %c0_i32_2 = arith.constant 0 : i32
    return %c0_i32, %c0_i32_0, %c0_i32_1 : i32, i32, i32
  }
  func.func @transform_4(%arg0: i32) -> (i32, i32) {
    %c0_i32 = arith.constant 0 : i32
    %c0_i32_0 = arith.constant 0 : i32
    %c0_i32_1 = arith.constant 0 : i32
    return %c0_i32, %c0_i32_0 : i32, i32
  }
  func.func @transform_5(%arg0: i32) -> (i32, i32, i32) {
    %c0_i32 = arith.constant 0 : i32
    %c0_i32_0 = arith.constant 0 : i32
    %c0_i32_1 = arith.constant 0 : i32
    return %arg0, %c0_i32, %c0_i32_0 : i32, i32, i32
  }
}

</mosaic_0001>

<bundles_post_ra>
// kernel: tpu_custom_call.1
= control target key start
LH: loop header
LB: loop body
LE: loop exit
PB: predicated region body
PF: predicated region fallthrough
CT: control target
= control target key end

     0   :  { %10 = vsyncpa [#allocation3], 0  ;;  %s2556_s0 = inlined_call_operand.vmem [shape: f32[2,8,32], index: 0, kind: input, shape index: {}]   ;;  %s2557_s1 = inlined_call_operand.vmem [shape: bf16[12,32,8], index: 1, kind: input, shape index: {}]   ;;  %s2558_s2 = inlined_call_operand.vmem [shape: f32[12,1,8], index: 2, kind: input, shape index: {}]   ;;  %s2559_s3 = inlined_call_operand.vmem [shape: bf16[4,8,32], index: 3, kind: input, shape index: {}]   ;;  %s2560_s4 = inlined_call_operand.vmem [shape: f32[1,32], index: 4, kind: input, shape index: {}]   ;;  %s2561_s5 = inlined_call_operand.hbm [shape: f32[2,8,32], index: 5, kind: output, shape index: {}]  }
   0x1   :  { %12 = vsyncpa [#allocation3 + $0x1], 0  ;;  %s2185_s18 = smov 0   ;;  %s2187_s19 = smov 0  }
   0x2   :  { %s2189_s20 = smov 0   ;;  %s2191_s21 = smov 0  }
   0x3 LB: > { %s2206_s22 = sadd.s32 4294967295, %s2150_s21   ;;  %s1708_s23 = sadd.s32 4294967294, %s2150_s21   ;;  %s2150_s21 = sphi %s2191_s21, %s2567_s21   ;;  %s2146_s20 = sphi %s2189_s20, %s2566_s20   ;;  %s2142_s19 = sphi %s2187_s19, %s2565_s19   ;;  %s2138_s18 = sphi %s2185_s18, %s2564_s18  }
   0x4   : > { %s2210_s24 = sadd.s32 1, %s2150_s21   ;;  %s135_s25 = sadd.s32 1, %s2146_s20 }
   0x5   : > { %s132_s26 = ssub.s32 %s2150_s21, %s2210_s24  ;;  %p145_p0 = scmp.ne.s32.totalorder %s2146_s20, %s2142_s19 }
   0x6   : > { %p133_p1 = scmp.eq.s32.totalorder %s132_s26, 0  ;;  %p146_p2 = scmp.eq.s32.totalorder %s2206_s22, 1 }
   0x7   : > { %p151_p3 = scmp.ne.s32.totalorder %s2142_s19, %s2138_s18  ;;  %p152_p4 = scmp.eq.s32.totalorder %s1708_s23, 1 }
   0x8   : > { %s2221_s27 = scalar_select %p133_p1, %s2146_s20, %s135_s25  }
   0x9   : > { %p2223_p5 = por %p146_p2, %p145_p0  ;;  %p2227_p6 = por %p152_p4, %p151_p3 }
   0xa   : > { %p1711_p7 = scmp.ge.s32.totalorder %s2150_s21, 1  ;;  %p189_p8 = scmp.lt.s32.totalorder %s2150_s21, 3 }
   0xc   : > { %p190_p9 = pnand %p1711_p7, %p189_p8 }
   0xd   : > { %p216_p10 = scmp.lt.s32.totalorder (!%p190_p9), %s2206_s22, 1  ;;  %s213_s10 = sand.u32 (!%p190_p9), 1, %s2142_s19  }
   0xe   : > { %193 = sbr.rel (%p190_p9) target bundleno = 1476 (0x5c4), region = 40  ;;  %s1712_s11 = sshll.u32 (!%p190_p9), %s213_s10, 3 }
   0xf   : > { %s1776_s14 = sshll.u32 (!%p190_p9), %s2206_s22, 7  ;;  %s215_s15 = scalar_lea.vmem (!%p190_p9), [#allocation2], %s1712_s11 }
  0x10   : > { %s1649_s16 = sshll.u32 (!%p190_p9), %s215_s15, 4  ;;  %s2520_s25 = scalar_lea.hbm (!%p190_p9), %s2561_s5, %s1776_s14  ;;  %s1650_s16 = int_to_ptr.vmem [resolvable:$true] %s1649_s16 }
  0x11   : > { %s1636_s26 = scalar_lea.sflag (!%p190_p9), [#allocation3], %s213_s10 }
  0x13   : > { %s217_s30 = scalar_select %p216_p10, %s2206_s22, 1  ;;  %vm222_vm0 = vcmask 261120   ;;  %v2048_v7 = vld [vmem:[%s2557_s1 + $0x8] sm:$0xff]   ;;  %v2049_v8 = vld [vmem:[%s2557_s1 + $0x18] sm:$0xff]   ;;  %v2152_v9 = vmov 0.0   ;;  %v2050_v10 = vld [vmem:[%s2557_s1] sm:$0xff]  }
  0x14   : > { %1839 = vmatprep.subr.bf16.mxu0 %v2152_v9  ;;  %1847 = vmatprep.subr.bf16.mxu1 %v2152_v9  ;;  %v2051_v11 = vld [vmem:[%s2557_s1 + $0x10] sm:$0xff]   ;;  %vm2153_vm1 = vmmov 0   ;;  %v2052_v17 = vld [vmem:[%s2557_s1 + $0x28] sm:$0xff]   ;;  %v2053_v18 = vld [vmem:[%s2557_s1 + $0x38] sm:$0xff]   ;;  %vm1009_vm2 = vcmask 64512   ;;  %vm1245_vm3 = vcmask 1043456  }
  0x15   : > { %s1713_s6 = sshll.u32 %s217_s30, 3  ;;  %1840 = vmatpush3.bf16.msra.mxu0 %v2048_v7  ;;  %1848 = vmatpush3.bf16.msra.mxu1 %v2049_v8  ;;  %v2054_v20 = vld [vmem:[%s2557_s1 + $0x20] sm:$0xff]   ;;  %v2055_v21 = vld [vmem:[%s2557_s1 + $0x30] sm:$0xff]   ;;  %v2056_v22 = vld [vmem:[%s2557_s1 + $0x48] sm:$0xff]   ;;  %s2090_s30 = scalar_lea.vmem %s1650_s16, 128 }
  0x16   : > { %s219_s9 = scalar_lea.vmem %s2556_s0, %s1713_s6  ;;  %1841 = vmatprep.subr.bf16.mxu0 %v2152_v9  ;;  %1849 = vmatprep.subr.bf16.mxu1 %v2152_v9  ;;  %v2057_v23 = vld [vmem:[%s2557_s1 + $0x58] sm:$0xff]   ;;  %v2058_v24 = vld [vmem:[%s2557_s1 + $0x40] sm:$0xff]   ;;  %v2059_v25 = vld [vmem:[%s2557_s1 + $0x50] sm:$0xff]   ;;  %p2091_p11 = scmp.ne.s32.totalorder %s1650_s16, %s2090_s30 }
  0x17   : > { %v221_v0 = vld [vmem:[%s219_s9] sm:$0xff]  ;;  %1843 = vmatprep.mubr.msk.bf16.mxu0 %vm2153_vm1, %v2152_v9  ;;  %1851 = vmatprep.mubr.msk.bf16.mxu1 %vm2153_vm1, %v2152_v9  ;;  %v2060_v26 = vld [vmem:[%s2557_s1 + $0x68] sm:$0xff]   ;;  %v2061_v27 = vld [vmem:[%s2557_s1 + $0x78] sm:$0xff]   ;;  %s2154_s22 = smov [#allocation2]  }
  0x18   : > { %v223_v1 = vsel %vm222_vm0, %v221_v0, 0.0  ;;  %v2062_v28 = vld [vmem:[%s2557_s1 + $0x60] sm:$0xff]   ;;  %v2063_v29 = vld [vmem:[%s2557_s1 + $0x70] sm:$0xff]   ;;  %v2064_v30 = vld [vmem:[%s2557_s1 + $0x88] sm:$0xff]   ;;  %p2092_p12 = pnand %p2091_p11, %p2223_p5  ;;  %s2094_s6 = sshll.u32 %s2154_s22, 4  ;;  %s2095_s6 = int_to_ptr.vmem [resolvable:$false] %s2094_s6 }
  0x19   : > { %224 = vadd.xlane.f32.xlu0 %v223_v1  ;;  %1842 = vmatpush3.bf16.msra.mxu0 %v2050_v10  ;;  %v2065_v31 = vld [vmem:[%s2557_s1 + $0x98] sm:$0xff]   ;;  %v2066_v32 = vld [vmem:[%s2557_s1 + $0x80] sm:$0xff]   ;;  %v2067_v33 = vld [vmem:[%s2557_s1 + $0x90] sm:$0xff]   ;;  %s2096_s7 = scalar_lea.vmem %s2095_s6, 256  ;;  %p2097_p0 = scmp.lt.s32.totalorder %s1650_s16, %s2095_s6 }
  0x1a   : > { %1850 = vmatpush3.bf16.msra.mxu1 %v2051_v11  ;;  %1855 = vmatprep.subr.bf16.mxu0 %v2152_v9  ;;  %v2068_v34 = vld [vmem:[%s2557_s1 + $0xa8] sm:$0xff]   ;;  %v2069_v35 = vld [vmem:[%s2557_s1 + $0xb8] sm:$0xff]   ;;  %v2070_v36 = vld [vmem:[%s2557_s1 + $0xa0] sm:$0xff]   ;;  %p2093_p13 = pneg %p2092_p12  ;;  %p2098_p1 = scmp.lt.s32.totalorder %s2096_s7, %s2090_s30 }
  0x1b   : > { %1863 = vmatprep.subr.bf16.mxu1 %v2152_v9  ;;  %v2071_v37 = vld [vmem:[%s2557_s1 + $0xb0] sm:$0xff]   ;;  %v1718_v54 = vld [vmem:[%s2558_s2 + $0x4] ss:$0 sm:$0xff]  ;;  %v1719_v55 = vld [vmem:[%s2558_s2 + $0x5] ss:$0 sm:$0xff] }
  0x1c   : > { %v1715_v1 = vld [vmem:[%s2558_s2 + $0x1] ss:$0 sm:$0xff]  ;;  %v1720_v8 = vld [vmem:[%s2558_s2 + $0x6] ss:$0 sm:$0xff]  ;;  %v1721_v10 = vld [vmem:[%s2558_s2 + $0x7] ss:$0 sm:$0xff]  ;;  %p2099_p2 = por %p2098_p1, %p2097_p0 }
  0x1e   : > { %p2100_p3 = pnand %p2099_p2, %p2093_p13 }
  0xa2   : > { %v225_v2 = vpop.xlane.xlu0 %224 }
  0xa3   : > { %v227_v3 = vmul.f32 0.03125, %v225_v2 }
  0xa5   : > { %v228_v4 = vsub.f32 %v221_v0, %v227_v3  ;;  %v1714_v0 = vld [vmem:[%s2558_s2] ss:$0 sm:$0xff] }
  0xa7   : > { %v229_v5 = vmul.f32 %v228_v4, %v228_v4 }
  0xa9   : > { %v230_v6 = vsel %vm222_vm0, %v229_v5, 0.0 }
  0xaa   : > { %231 = vadd.xlane.f32.xlu0 %v230_v6 }
 0x133   : > { %v232_v12 = vpop.xlane.xlu0 %231 }
 0x134   : > { %v233_v13 = vmul.f32 0.03125, %v232_v12 }
 0x136   : > { %v234_v14 = vadd.f32 1e-05, %v233_v13 }
 0x138   : > { %2072 = vrsqrt.f32 %v234_v14 }
 0x145   : > { %v2073_v15 = vpop.eup %2072 }
 0x146   : > { %v236_v16 = vmul.f32 %v2073_v15, %v228_v4 }
 0x148   : > { %v2268_v19 = vpack.c.bf16 %v236_v16, %v236_v16 }
 0x14a   : > { %1844 = vmatmul.mubr.msk.bf16.vlgmr.msra.gmra.mxu0 %vm222_vm0, %v2268_v19  ;;  %1852 = vmatmul.mubr.msk.bf16.vlgmr.msra.gmra.mxu1 %vm222_vm0, %v2268_v19 }
 0x14b   : > { %1856 = vmatpush3.bf16.msra.mxu0 %v2052_v17  ;;  %1864 = vmatpush3.bf16.msra.mxu1 %v2053_v18 }
 0x14c   : > { %1857 = vmatprep.subr.bf16.mxu0 %v2152_v9  ;;  %1865 = vmatprep.subr.bf16.mxu1 %v2152_v9 }
 0x14d   : > { %1859 = vmatprep.mubr.msk.bf16.mxu0 %vm2153_vm1, %v2152_v9  ;;  %1867 = vmatprep.mubr.msk.bf16.mxu1 %vm2153_vm1, %v2152_v9 }
 0x14f   : > { %1858 = vmatpush3.bf16.msra.mxu0 %v2054_v20  ;;  %1866 = vmatpush3.bf16.msra.mxu1 %v2055_v21 }
 0x150   : > { %1871 = vmatprep.subr.bf16.mxu0 %v2152_v9  ;;  %1879 = vmatprep.subr.bf16.mxu1 %v2152_v9 }
 0x152   : > { %1860 = vmatmul.mubr.msk.bf16.vlgmr.msra.gmra.mxu0 %vm222_vm0, %v2268_v19  ;;  %1868 = vmatmul.mubr.msk.bf16.vlgmr.msra.gmra.mxu1 %vm222_vm0, %v2268_v19 }
 0x153   : > { %1872 = vmatpush3.bf16.msra.mxu0 %v2056_v22  ;;  %1880 = vmatpush3.bf16.msra.mxu1 %v2057_v23  ;;  %v1716_v23 = vld [vmem:[%s2558_s2 + $0x2] ss:$0 sm:$0xff] }
 0x154   : > { %1873 = vmatprep.subr.bf16.mxu0 %v2152_v9  ;;  %1881 = vmatprep.subr.bf16.mxu1 %v2152_v9 }
 0x155   : > { %1875 = vmatprep.mubr.msk.bf16.mxu0 %vm2153_vm1, %v2152_v9  ;;  %1883 = vmatprep.mubr.msk.bf16.mxu1 %vm2153_vm1, %v2152_v9 }
 0x157   : > { %1874 = vmatpush3.bf16.msra.mxu0 %v2058_v24  ;;  %1882 = vmatpush3.bf16.msra.mxu1 %v2059_v25  ;;  %v1717_v24 = vld [vmem:[%s2558_s2 + $0x3] ss:$0 sm:$0xff] }
 0x158   : > { %1887 = vmatprep.subr.bf16.mxu0 %v2152_v9  ;;  %1895 = vmatprep.subr.bf16.mxu1 %v2152_v9 }
 0x15a   : > { %1876 = vmatmul.mubr.msk.bf16.vlgmr.msra.gmra.mxu0 %vm222_vm0, %v2268_v19  ;;  %1884 = vmatmul.mubr.msk.bf16.vlgmr.msra.gmra.mxu1 %vm222_vm0, %v2268_v19 }
 0x15b   : > { %1888 = vmatpush3.bf16.msra.mxu0 %v2060_v26  ;;  %1896 = vmatpush3.bf16.msra.mxu1 %v2061_v27 }
 0x15c   : > { %1889 = vmatprep.subr.bf16.mxu0 %v2152_v9  ;;  %1897 = vmatprep.subr.bf16.mxu1 %v2152_v9 }
 0x15d   : > { %1891 = vmatprep.mubr.msk.bf16.mxu0 %vm2153_vm1, %v2152_v9  ;;  %1899 = vmatprep.mubr.msk.bf16.mxu1 %vm2153_vm1, %v2152_v9 }
 0x15f   : > { %1890 = vmatpush3.bf16.msra.mxu0 %v2062_v28  ;;  %1898 = vmatpush3.bf16.msra.mxu1 %v2063_v29 }
 0x160   : > { %1903 = vmatprep.subr.bf16.mxu0 %v2152_v9  ;;  %1911 = vmatprep.subr.bf16.mxu1 %v2152_v9 }
 0x162   : > { %1892 = vmatmul.mubr.msk.bf16.vlgmr.msra.gmra.mxu0 %vm222_vm0, %v2268_v19  ;;  %1900 = vmatmul.mubr.msk.bf16.vlgmr.msra.gmra.mxu1 %vm222_vm0, %v2268_v19 }
 0x163   : > { %1904 = vmatpush3.bf16.msra.mxu0 %v2064_v30  ;;  %1912 = vmatpush3.bf16.msra.mxu1 %v2065_v31  ;;  %v1722_v31 = vld [vmem:[%s2558_s2 + $0x8] ss:$0 sm:$0xff] }
 0x164   : > { %1905 = vmatprep.subr.bf16.mxu0 %v2152_v9  ;;  %1913 = vmatprep.subr.bf16.mxu1 %v2152_v9 }
 0x165   : > { %1907 = vmatprep.mubr.msk.bf16.mxu0 %vm2153_vm1, %v2152_v9  ;;  %1915 = vmatprep.mubr.msk.bf16.mxu1 %vm2153_vm1, %v2152_v9 }
 0x167   : > { %1906 = vmatpush3.bf16.msra.mxu0 %v2066_v32  ;;  %1914 = vmatpush3.bf16.msra.mxu1 %v2067_v33  ;;  %v1723_v32 = vld [vmem:[%s2558_s2 + $0x9] ss:$0 sm:$0xff] }
 0x168   : > { %1919 = vmatprep.subr.bf16.mxu0 %v2152_v9  ;;  %1927 = vmatprep.subr.bf16.mxu1 %v2152_v9 }
 0x16a   : > { %1908 = vmatmul.mubr.msk.bf16.vlgmr.msra.gmra.mxu0 %vm222_vm0, %v2268_v19  ;;  %1916 = vmatmul.mubr.msk.bf16.vlgmr.msra.gmra.mxu1 %vm222_vm0, %v2268_v19 }
 0x16b   : > { %1920 = vmatpush3.bf16.msra.mxu0 %v2068_v34  ;;  %1928 = vmatpush3.bf16.msra.mxu1 %v2069_v35 }
 0x16c   : > { %1921 = vmatprep.subr.bf16.mxu0 %v2152_v9  ;;  %1929 = vmatprep.subr.bf16.mxu1 %v2152_v9 }
 0x16d   : > { %1923 = vmatprep.mubr.msk.bf16.mxu0 %vm2153_vm1, %v2152_v9  ;;  %1931 = vmatprep.mubr.msk.bf16.mxu1 %vm2153_vm1, %v2152_v9 }
 0x16f   : > { %1922 = vmatpush3.bf16.msra.mxu0 %v2070_v36  ;;  %1930 = vmatpush3.bf16.msra.mxu1 %v2071_v37 }
 0x170   : > { %1935 = vmatprep.subr.bf16.mxu0 %v2152_v9  ;;  %1941 = vmatprep.subr.bf16.mxu1 %v2152_v9 }
 0x172   : > { %1924 = vmatmul.mubr.msk.bf16.vlgmr.msra.gmra.mxu0 %vm222_vm0, %v2268_v19  ;;  %1932 = vmatmul.mubr.msk.bf16.vlgmr.msra.gmra.mxu1 %vm222_vm0, %v2268_v19 }
 0x173   : > { %1937 = vmatprep.mubr.msk.bf16.mxu0 %vm2153_vm1, %v2152_v9  ;;  %1943 = vmatprep.mubr.msk.bf16.mxu1 %vm2153_vm1, %v2152_v9 }
 0x20a   : > { %v419_v38 = vpop.f32.mrf.mxu0  ;;  %v471_v39 = vpop.f32.mrf.mxu1 }
 0x20b   : > { %v420_v11 = vadd.f32 %v1714_v0, %v419_v38  ;;  %v472_v12 = vadd.f32 %v1715_v1, %v471_v39 }
 0x20c   : > { %v1845_v40 = vpop.f32.mrf.mxu0  ;;  %v1853_v41 = vpop.f32.mrf.mxu1 }
 0x20d   : > { %v997_v19 = vpack.c.bf16 %v420_v11, %v420_v11  ;;  %v998_v20 = vpack.c.bf16 %v472_v12, %v472_v12 }
 0x20e   : > { %v422_v42 = vpop.f32.mrf.mxu0  ;;  %v474_v43 = vpop.f32.mrf.mxu1 }
 0x210   : > { %v1846_v44 = vpop.f32.mrf.mxu0  ;;  %v1854_v45 = vpop.f32.mrf.mxu1 }
 0x212   : > { %v523_v46 = vpop.f32.mrf.mxu0  ;;  %v575_v47 = vpop.f32.mrf.mxu1 }
 0x213   : > { %v524_v33 = vadd.f32 %v1716_v23, %v523_v46  ;;  %v576_v34 = vadd.f32 %v1717_v24, %v575_v47 }
 0x214   : > { %v1861_v48 = vpop.f32.mrf.mxu0  ;;  %v1869_v49 = vpop.f32.mrf.mxu1 }
 0x215   : > { %v999_v41 = vpack.c.bf16 %v524_v33, %v524_v33  ;;  %v1000_v42 = vpack.c.bf16 %v576_v34, %v576_v34 }
 0x216   : > { %v526_v50 = vpop.f32.mrf.mxu0  ;;  %v578_v51 = vpop.f32.mrf.mxu1 }
 0x218   : > { %v1862_v52 = vpop.f32.mrf.mxu0  ;;  %v1870_v53 = vpop.f32.mrf.mxu1 }
 0x21a   : > { %v627_v56 = vpop.f32.mrf.mxu0  ;;  %v679_v57 = vpop.f32.mrf.mxu1 }
 0x21b   : > { %v628_v58 = vadd.f32 %v1718_v54, %v627_v56  ;;  %v680_v59 = vadd.f32 %v1719_v55, %v679_v57 }
 0x21c   : > { %v1877_v60 = vpop.f32.mrf.mxu0  ;;  %v1885_v61 = vpop.f32.mrf.mxu1 }
 0x21d   : > { %v1001_v62 = vpack.c.bf16 %v628_v58, %v628_v58  ;;  %v1002_v63 = vpack.c.bf16 %v680_v59, %v680_v59 }
 0x21e   : > { %v630_v2 = vpop.f32.mrf.mxu0  ;;  %v682_v3 = vpop.f32.mrf.mxu1 }
 0x21f   : > { %v1014_v4 = vsel %vm1009_vm2, %v1001_v62, 0  ;;  %v1060_v5 = vsel %vm1009_vm2, %v1002_v63, 0 }
 0x220   : > { %v1878_v6 = vpop.f32.mrf.mxu0  ;;  %v1886_v7 = vpop.f32.mrf.mxu1  ;;  %1936 = vmatpush3.bf16.xpose.msra.mxu0 %v1014_v4  ;;  %1942 = vmatpush3.bf16.xpose.msra.mxu1 %v1060_v5 }
 0x221   : > { %1947 = vmatprep.subr.bf16.mxu0 %v2152_v9  ;;  %1953 = vmatprep.subr.bf16.mxu1 %v2152_v9 }
 0x222   : > { %v731_v13 = vpop.f32.mrf.mxu0  ;;  %v783_v14 = vpop.f32.mrf.mxu1 }
 0x223   : > { %v732_v15 = vadd.f32 %v1720_v8, %v731_v13  ;;  %v784_v16 = vadd.f32 %v1721_v10, %v783_v14 }
 0x224   : > { %v1893_v17 = vpop.f32.mrf.mxu0  ;;  %v1901_v18 = vpop.f32.mrf.mxu1 }
 0x225   : > { %v1003_v21 = vpack.c.bf16 %v732_v15, %v732_v15  ;;  %v1004_v22 = vpack.c.bf16 %v784_v16, %v784_v16 }
 0x226   : > { %v734_v25 = vpop.f32.mrf.mxu0  ;;  %v786_v26 = vpop.f32.mrf.mxu1 }
 0x227   : > { %v1106_v27 = vsel %vm1009_vm2, %v1003_v21, 0  ;;  %v1152_v28 = vsel %vm1009_vm2, %v1004_v22, 0  ;;  %1938 = vmatmul.mubr.msk.bf16.vlgmr.msra.gmra.mxu0 %vm1009_vm2, %v997_v19  ;;  %1944 = vmatmul.mubr.msk.bf16.vlgmr.msra.gmra.mxu1 %vm1009_vm2, %v998_v20 }
 0x228   : > { %v1894_v29 = vpop.f32.mrf.mxu0  ;;  %v1902_v30 = vpop.f32.mrf.mxu1  ;;  %1948 = vmatpush3.bf16.xpose.msra.mxu0 %v1106_v27  ;;  %1954 = vmatpush3.bf16.xpose.msra.mxu1 %v1152_v28 }
 0x229   : > { %1949 = vmatprep.mubr.msk.bf16.mxu0 %vm2153_vm1, %v2152_v9  ;;  %1955 = vmatprep.mubr.msk.bf16.mxu1 %vm2153_vm1, %v2152_v9 }
 0x22a   : > { %v835_v35 = vpop.f32.mrf.mxu0  ;;  %v887_v36 = vpop.f32.mrf.mxu1  ;;  %1959 = vmatprep.subr.bf16.mxu0 %v2152_v9  ;;  %1965 = vmatprep.subr.bf16.mxu1 %v2152_v9 }
 0x22b   : > { %v836_v37 = vadd.f32 %v1722_v31, %v835_v35  ;;  %v888_v38 = vadd.f32 %v1723_v32, %v887_v36 }
 0x22c   : > { %v1909_v39 = vpop.f32.mrf.mxu0  ;;  %v1917_v40 = vpop.f32.mrf.mxu1 }
 0x22d   : > { %v1005_v43 = vpack.c.bf16 %v836_v37, %v836_v37  ;;  %v1006_v44 = vpack.c.bf16 %v888_v38, %v888_v38  ;;  %v1724_v38 = vld [vmem:[%s2558_s2 + $0xa] ss:$0 sm:$0xff] }
 0x22e   : > { %v838_v45 = vpop.f32.mrf.mxu0  ;;  %v890_v46 = vpop.f32.mrf.mxu1 }
 0x22f   : > { %v1247_v47 = vsel %vm1245_vm3, %v1005_v43, 0  ;;  %v1293_v48 = vsel %vm1245_vm3, %v1006_v44, 0  ;;  %1950 = vmatmul.mubr.msk.bf16.vlgmr.msra.gmra.mxu0 %vm1009_vm2, %v999_v41  ;;  %1956 = vmatmul.mubr.msk.bf16.vlgmr.msra.gmra.mxu1 %vm1009_vm2, %v1000_v42  ;;  %v1725_v42 = vld [vmem:[%s2558_s2 + $0xb] ss:$0 sm:$0xff] }
 0x230   : > { %v1910_v49 = vpop.f32.mrf.mxu0  ;;  %v1918_v50 = vpop.f32.mrf.mxu1  ;;  %1960 = vmatpush3.bf16.msra.mxu0 %v1247_v47  ;;  %1966 = vmatpush3.bf16.msra.mxu1 %v1293_v48 }
 0x231   : > { %1961 = vmatprep.mubr.msk.bf16.mxu0 %vm2153_vm1, %v2152_v9  ;;  %1971 = vmatprep.subr.bf16.mxu0 %v2152_v9 }
 0x232   : > { %v2443_v51 = vpop.f32.mrf.mxu0  ;;  %v2445_v52 = vpop.f32.mrf.mxu1  ;;  %1967 = vmatprep.mubr.msk.bf16.mxu1 %vm2153_vm1, %v2152_v9  ;;  %1977 = vmatprep.subr.bf16.mxu1 %v2152_v9 }
 0x233   : > { %v940_v41 = vadd.f32 %v1724_v38, %v2443_v51  ;;  %v992_v45 = vadd.f32 %v1725_v42, %v2445_v52  ;;  %v1774_v42 = vld [vmem:[%s2560_s4] ss:$0 sm:$0xff] }
 0x234   : > { %v1925_v53 = vpop.f32.mrf.mxu0  ;;  %v1933_v54 = vpop.f32.mrf.mxu1 }
 0x235   : > { %v1007_v44 = vpack.c.bf16 %v940_v41, %v940_v41  ;;  %v1008_v50 = vpack.c.bf16 %v992_v45, %v992_v45 }
 0x236   : > { %v942_v55 = vpop.f32.mrf.mxu0  ;;  %v994_v56 = vpop.f32.mrf.mxu1 }
 0x237   : > { %v1339_v49 = vsel %vm1245_vm3, %v1007_v44, 0  ;;  %v1385_v52 = vsel %vm1245_vm3, %v1008_v50, 0  ;;  %v1431_v56 = vld [vmem:[%s2559_s3] sm:$0xf] }
 0x238   : > { %v1926_v57 = vpop.f32.mrf.mxu0  ;;  %v1934_v58 = vpop.f32.mrf.mxu1 }
 0x2e7   : > { %v1050_v59 = vpop.f32.mrf.mxu0  ;;  %v1096_v60 = vpop.f32.mrf.mxu1 }
 0x2e8   : > { %v1194_v61 = vsel %vm1009_vm2, %v1050_v59, -inf  ;;  %v1197_v2 = vsel %vm1009_vm2, %v1096_v60, -inf }
 0x2e9   : > { %v1945_v62 = vpop.f32.mrf.mxu1  ;;  %1195 = vmax.xlane.f32.xlu1 %v1194_v61  ;;  %v1939_v63 = vpop.f32.mrf.mxu0 }
 0x2ea   : > { %v1432_v62 = vld [vmem:[%s2559_s3 + $0x4] sm:$0xf] }
 0x2eb   : > { %v1053_v0 = vpop.f32.mrf.mxu0  ;;  %v1099_v1 = vpop.f32.mrf.mxu1  ;;  %v1485_v63 = vsel %vm1245_vm3, %v1432_v62, 0 }
 0x2ec   : > { %v1433_v0 = vld [vmem:[%s2559_s3 + $0x8] sm:$0xf] }
 0x2ed   : > { %v1946_v3 = vpop.f32.mrf.mxu1  ;;  %1198 = vmax.xlane.f32.xlu1 %v1197_v2  ;;  %v1940_v4 = vpop.f32.mrf.mxu0 }
 0x2ee   : > { %v1531_v3 = vsel %vm1245_vm3, %v1433_v0, 0 }
 0x2ef   : > { %v1142_v5 = vpop.f32.mrf.mxu0  ;;  %v1188_v6 = vpop.f32.mrf.mxu1 }
 0x2f0   : > { %v1203_v7 = vsel %vm1009_vm2, %v1188_v6, -inf  ;;  %v1200_v8 = vsel %vm1009_vm2, %v1142_v5, -inf }
 0x2f1   : > { %v1957_v10 = vpop.f32.mrf.mxu1  ;;  %1204 = vmax.xlane.f32.xlu1 %v1203_v7  ;;  %1201 = vmax.xlane.f32.xlu0 %v1200_v8  ;;  %v1951_v11 = vpop.f32.mrf.mxu0 }
 0x2f3   : > { %v1145_v12 = vpop.f32.mrf.mxu0  ;;  %v1191_v13 = vpop.f32.mrf.mxu1 }
 0x2f5   : > { %v1952_v14 = vpop.f32.mrf.mxu0  ;;  %v1958_v15 = vpop.f32.mrf.mxu1 }
 0x372   : > { %v1196_v16 = vpop.xlane.xlu1 %1195 }
 0x373   : > { %v1206_v17 = vsub.f32 %v1050_v59, %v1196_v16 }
 0x375   : > { %v1210_v18 = vmul.f32 1.442695, %v1206_v17 }
 0x376   : > { %v1199_v19 = vpop.xlane.xlu1 %1198 }
 0x377   : > { %2074 = vpow2.f32 %v1210_v18  ;;  %v1207_v20 = vsub.f32 %v1096_v60, %v1199_v19  ;;  %v1439_v60 = vsel %vm1245_vm3, %v1431_v56, 0 }
 0x379   : > { %v1212_v21 = vmul.f32 1.442695, %v1207_v20 }
 0x37a   : > { %v1205_v22 = vpop.xlane.xlu1 %1204  ;;  %v1202_v23 = vpop.xlane.xlu0 %1201 }
 0x37b   : > { %2076 = vpow2.f32 %v1212_v21  ;;  %v1209_v24 = vsub.f32 %v1188_v6, %v1205_v22  ;;  %v1208_v25 = vsub.f32 %v1142_v5, %v1202_v23  ;;  %v1434_v5 = vld [vmem:[%s2559_s3 + $0xc] sm:$0xf] }
 0x37c   : > { %v1577_v10 = vsel %vm1245_vm3, %v1434_v5, 0 }
 0x37d   : > { %v1216_v26 = vmul.f32 1.442695, %v1209_v24  ;;  %v1214_v27 = vmul.f32 1.442695, %v1208_v25 }
 0x37f   : > { %2078 = vpow2.f32 %v1216_v26 }
 0x380   : > { %2080 = vpow2.f32 %v1214_v27 }
 0x384   : > { %v2075_v28 = vpop.eup %2074 }
 0x385   : > { %v1218_v29 = vsel %vm1009_vm2, %v2075_v28, 0.0 }
 0x386   : > { %1219 = vadd.xlane.f32.xlu0 %v1218_v29 }
 0x388   : > { %v2077_v30 = vpop.eup %2076 }
 0x389   : > { %v1221_v31 = vsel %vm1009_vm2, %v2077_v30, 0.0 }
 0x38a   : > { %1222 = vadd.xlane.f32.xlu1 %v1221_v31 }
 0x38c   : > { %v2079_v32 = vpop.eup %2078 }
 0x38d   : > { %v2081_v33 = vpop.eup %2080  ;;  %v1227_v34 = vsel %vm1009_vm2, %v2079_v32, 0.0 }
 0x38e   : > { %1228 = vadd.xlane.f32.xlu1 %v1227_v34  ;;  %v1224_v35 = vsel %vm1009_vm2, %v2081_v33, 0.0 }
 0x38f   : > { %1225 = vadd.xlane.f32.xlu0 %v1224_v35 }
 0x40f   : > { %v1220_v36 = vpop.xlane.xlu0 %1219 }
 0x410   : > { %2082 = vrcp.f32 %v1220_v36 }
 0x413   : > { %v1223_v37 = vpop.xlane.xlu1 %1222 }
 0x414   : > { %2084 = vrcp.f32 %v1223_v37 }
 0x417   : > { %v1229_v39 = vpop.xlane.xlu1 %1228 }
 0x418   : > { %2086 = vrcp.f32 %v1229_v39  ;;  %v1226_v40 = vpop.xlane.xlu0 %1225 }
 0x419   : > { %2088 = vrcp.f32 %v1226_v40 }
 0x41d   : > { %v2083_v43 = vpop.eup %2082 }
 0x41e   : > { %v1234_v46 = vmul.f32 %v2083_v43, %v2075_v28 }
 0x420   : > { %v1238_v47 = vpack.c.bf16 %v1234_v46, %v1234_v46 }
 0x421   : > { %v2085_v48 = vpop.eup %2084 }
 0x422   : > { %1962 = vmatmul.mubr.msk.bf16.vlgmr.msra.gmra.mxu0 %vm1009_vm2, %v1238_v47  ;;  %v1235_v53 = vmul.f32 %v2085_v48, %v2077_v30 }
 0x423   : > { %1972 = vmatpush3.bf16.msra.mxu0 %v1339_v49  ;;  %1973 = vmatprep.mubr.msk.bf16.mxu0 %vm2153_vm1, %v2152_v9 }
 0x424   : > { %v1239_v51 = vpack.c.bf16 %v1235_v53, %v1235_v53  ;;  %1983 = vmatprep.subr.bf16.mxu0 %v2152_v9 }
 0x425   : > { %v2087_v54 = vpop.eup %2086 }
 0x426   : > { %v2089_v55 = vpop.eup %2088  ;;  %1968 = vmatmul.mubr.msk.bf16.vlgmr.msra.gmra.mxu1 %vm1009_vm2, %v1239_v51  ;;  %v1237_v58 = vmul.f32 %v2087_v54, %v2079_v32 }
 0x427   : > { %1978 = vmatpush3.bf16.msra.mxu1 %v1385_v52  ;;  %v1236_v57 = vmul.f32 %v2089_v55, %v2081_v33  ;;  %1979 = vmatprep.mubr.msk.bf16.mxu1 %vm2153_vm1, %v2152_v9 }
 0x428   : > { %1989 = vmatprep.subr.bf16.mxu1 %v2152_v9  ;;  %v1241_v61 = vpack.c.bf16 %v1237_v58, %v1237_v58 }
 0x429   : > { %v1240_v59 = vpack.c.bf16 %v1236_v57, %v1236_v57 }
 0x42b   : > { %1974 = vmatmul.mubr.msk.bf16.vlgmr.msra.gmra.mxu0 %vm1009_vm2, %v1240_v59 }
 0x42c   : > { %1984 = vmatpush3.bf16.msra.mxu0 %v1439_v60  ;;  %1985 = vmatprep.mubr.msk.bf16.mxu0 %vm2153_vm1, %v2152_v9 }
 0x42d   : > { %1995 = vmatprep.subr.bf16.mxu0 %v2152_v9 }
 0x42e   : > { %1980 = vmatmul.mubr.msk.bf16.vlgmr.msra.gmra.mxu1 %vm1009_vm2, %v1241_v61 }
 0x42f   : > { %1991 = vmatprep.mubr.msk.bf16.mxu1 %vm2153_vm1, %v2152_v9  ;;  %1990 = vmatpush3.bf16.msra.mxu1 %v1485_v63 }
 0x430   : > { %2001 = vmatprep.subr.bf16.mxu1 %v2152_v9 }
 0x4e2   : > { %v1283_v1 = vpop.f32.mrf.mxu0 }
 0x4e3   : > { %v1427_v2 = vpack.c.bf16 %v1283_v1, %v1283_v1 }
 0x4e4   : > { %v1963_v4 = vpop.f32.mrf.mxu0 }
 0x4e5   : > { %1986 = vmatmul.mubr.msk.bf16.vlgmr.msra.gmra.mxu0 %vm1009_vm2, %v1427_v2 }
 0x4e6   : > { %v1286_v6 = vpop.f32.mrf.mxu0  ;;  %v1329_v7 = vpop.f32.mrf.mxu1  ;;  %1996 = vmatpush3.bf16.msra.mxu0 %v1531_v3  ;;  %1997 = vmatprep.mubr.msk.bf16.mxu0 %vm2153_vm1, %v2152_v9 }
 0x4e7   : > { %v1428_v8 = vpack.c.bf16 %v1329_v7, %v1329_v7 }
 0x4e8   : > { %v1964_v11 = vpop.f32.mrf.mxu0  ;;  %v1969_v12 = vpop.f32.mrf.mxu1 }
 0x4e9   : > { %1992 = vmatmul.mubr.msk.bf16.vlgmr.msra.gmra.mxu1 %vm1009_vm2, %v1428_v8 }
 0x4ea   : > { %v1332_v13 = vpop.f32.mrf.mxu1  ;;  %2002 = vmatpush3.bf16.msra.mxu1 %v1577_v10  ;;  %2003 = vmatprep.mubr.msk.bf16.mxu1 %vm2153_vm1, %v2152_v9 }
 0x4eb   : > { %v1375_v14 = vpop.f32.mrf.mxu0 }
 0x4ec   : > { %v1429_v15 = vpack.c.bf16 %v1375_v14, %v1375_v14  ;;  %v1970_v16 = vpop.f32.mrf.mxu1 }
 0x4ed   : > { %v1975_v17 = vpop.f32.mrf.mxu0 }
 0x4ee   : > { %1998 = vmatmul.mubr.msk.bf16.vlgmr.msra.gmra.mxu0 %vm1009_vm2, %v1429_v15  ;;  %v1421_v18 = vpop.f32.mrf.mxu1 }
 0x4ef   : > { %v1378_v19 = vpop.f32.mrf.mxu0  ;;  %v1430_v20 = vpack.c.bf16 %v1421_v18, %v1421_v18 }
 0x4f0   : > { %v1981_v21 = vpop.f32.mrf.mxu1 }
 0x4f1   : > { %v1976_v22 = vpop.f32.mrf.mxu0  ;;  %2004 = vmatmul.mubr.msk.bf16.vlgmr.msra.gmra.mxu1 %vm1009_vm2, %v1430_v20 }
 0x4f2   : > { %v1424_v23 = vpop.f32.mrf.mxu1 }
 0x4f4   : > { %v1982_v24 = vpop.f32.mrf.mxu1 }
 0x5a5   : > { %v1475_v25 = vpop.f32.mrf.mxu0 }
 0x5a6   : > { %v1619_v32 = vsel %vm222_vm0, %v1475_v25, 0.0 }
 0x5a7   : > { %v1987_v26 = vpop.f32.mrf.mxu0 }
 0x5a9   : > { %v1478_v27 = vpop.f32.mrf.mxu0  ;;  %v1521_v9 = vpop.f32.mrf.mxu1 }
 0x5aa   : > { %v1620_v30 = vsel %vm222_vm0, %v1521_v9, 0.0 }
 0x5ab   : > { %v1988_v28 = vpop.f32.mrf.mxu0  ;;  %v1993_v29 = vpop.f32.mrf.mxu1  ;;  %v1621_v34 = vadd.f32 %v1620_v30, %v1619_v32 }
 0x5ad   : > { %v1524_v31 = vpop.f32.mrf.mxu1 }
 0x5ae   : > { %v1567_v33 = vpop.f32.mrf.mxu0 }
 0x5af   : > { %v1622_v35 = vsel %vm222_vm0, %v1567_v33, 0.0  ;;  %v1994_v36 = vpop.f32.mrf.mxu1 }
 0x5b0   : > { %v1999_v37 = vpop.f32.mrf.mxu0  ;;  %v1623_v38 = vadd.f32 %v1622_v35, %v1621_v34 }
 0x5b1   : > { %v1613_v39 = vpop.f32.mrf.mxu1 }
 0x5b2   : > { %v1570_v40 = vpop.f32.mrf.mxu0  ;;  %v1624_v41 = vsel %vm222_vm0, %v1613_v39, 0.0 }
 0x5b3   : > { %v1625_v43 = vadd.f32 %v1624_v41, %v1623_v38  ;;  %v2005_v44 = vpop.f32.mrf.mxu1 }
 0x5b4   : > { %v2000_v45 = vpop.f32.mrf.mxu0 }
 0x5b5   : > { %v1633_v46 = vadd.f32 %v1774_v42, %v1625_v43  ;;  %v1616_v47 = vpop.f32.mrf.mxu1 }
 0x5b7   : > { %v2006_v48 = vpop.f32.mrf.mxu1  ;;  %1634 = vst.msk [vmem:[%s215_s15] sm:$0xff] %vm222_vm0, %v1633_v46 }
 0x5b8   : > { %2103 = shalt.err (!%p2100_p3)
}
 0x5b9   : > { %s2104_s8 = scalar_lea.hbm %s2520_s25, 128  ;;  %s2108_s11 = scalar_lea.hbm %s2561_s5, 256 }
 0x5ba   : > { %p2105_p4 = scmp.ne.s32.totalorder %s2520_s25, %s2104_s8  ;;  %p2109_p9 = scmp.lt.s32.totalorder %s2520_s25, %s2561_s5 }
 0x5bb   : > { %p2110_p10 = scmp.lt.s32.totalorder %s2108_s11, %s2104_s8 }
 0x5bc   : > { %p2106_p7 = pnand %p2105_p4, %p2223_p5 }
 0x5bd   : > { %p2111_p11 = por %p2110_p10, %p2109_p9 }
 0x5be   : > { %p2107_p8 = pneg %p2106_p7 }
 0x5c0   : > { %p2112_p12 = pnand %p2111_p11, %p2107_p8 }
 0x5c2   : > { %2115 = shalt.err (!%p2112_p12)
}
 0x5c3   : > { %2007 = dma.vmem_to_hbm [thread:$0]  (%p2223_p5), %s1650_s16, 128, %s2520_s25, %s1636_s26  }
 0x5c4 PF: > { %p2013_p13 = scmp.ge.s32.totalorder %s2150_s21, 2  ;;  %s1661_s14 = sand.u32 1, %s2138_s18  }
 0x5c5   : > { %s1662_s15 = scalar_lea.sflag [#allocation3], %s1661_s14 }
 0x5c6   : > { %p2010_p0 = pnand %p2013_p13, %p2227_p6 }
 0x5c8   : > { %p2011_p1 = pneg %p2010_p0 }
 0x5ca   : > { %2133 = dma.done.wait (%p2011_p1), %s1662_s15, 128  }
 0x5cb   : > { %2135 = vsyncadd (%p2011_p1), %s1662_s15, 4294967168  ;;  %p15_p2 = scmp.ge.s32.totalorder %s2210_s24, 4   ;;  %s2564_s18 = smov %s2142_s19 }
 0x5cc   : > { %s2565_s19 = smov %s2146_s20  ;;  %s2566_s20 = smov %s2221_s27 }
 0x5cd   : > { %s2567_s21 = smov %s2210_s24  ;;  %17 = sbr.rel (!%p15_p2) target bundleno = 3 (0x3), region = 75 }
 0x5d2   :  { %1667 = vsyncpa [#allocation3], 1 }
 0x5d3   :  { %1669 = vsyncpa [#allocation3 + $0x1], 1 }

</bundles_post_ra>
